<compile_context>
chip_gen: v7x
topology: tpu7x:2x2x1
jax: 0.10.0
libtpu: 0.0.40
codegen_flags: <defaults>
</compile_context>

<pallas_src>
import jax
import jax.numpy as jnp
from jax import lax
from jax.experimental import pallas as pl
from jax.experimental.pallas import tpu as pltpu

_EPS = 1e-5
_PREC = lax.Precision.HIGHEST  # pure-JAX reference only


def residual_block_kernel(xm_ref, xh_ref, w1_ref, w2_ref, w3_ref,
                          b1_ref, b2_ref, b3_ref, o_ref):
    """One (image, row-tile) grid step.

    xm_ref : (1, TH, W, C)   input rows of this tile (original dtype, e.g. f32)
    xh_ref : (1, 2, W, C)    halo rows (row above / row below the tile, from un-padded x)
    w1_ref : (C, C)    bf16  conv1x1 weight, BN1 scale folded
    w2_ref : (3, 3C, C) bf16 conv3x3 weights grouped per ky (rows ordered kx-major), BN2 folded
    w3_ref : (C, C)    bf16  conv1x1 weight, BN3 scale folded
    b*_ref : (1, C)    f32   folded BatchNorm biases
    """
    _, TH, W, C = xm_ref.shape
    h = pl.program_id(1)
    n_h = pl.num_programs(1)
    bf = jnp.bfloat16

    # ---- fused conv1x1 + BN1 + ReLU over tile rows AND halo rows: one MXU pass --------
    xm = xm_ref[...].reshape(TH, W, C)                       # original dtype (kept for residual)
    xh = xh_ref[...].reshape(2, W, C)
    x_all = jnp.concatenate(
        [xh[0:1].astype(bf), xm.astype(bf), xh[1:2].astype(bf)], axis=0)  # (TH+2, W, C) bf16
    y1 = jnp.dot(x_all.reshape((TH + 2) * W, C), w1_ref[...],
                 preferred_element_type=jnp.float32)
    y1 = jnp.maximum(y1 + b1_ref[...], 0.0)                  # ((TH+2)*W, C) f32

    # Halo rows that fall outside the image must be ZERO padding for the 3x3 conv
    # (not ReLU(bias) computed from a zero input row).
    row = lax.broadcasted_iota(jnp.int32, ((TH + 2) * W, 1), 0)
    valid = jnp.logical_and(jnp.logical_or(row >= W, h > 0),
                            jnp.logical_or(row < (TH + 1) * W, h < n_h - 1))
    y1 = jnp.where(valid, y1, 0.0).astype(bf).reshape(TH + 2, W, C)

    # ---- conv3x3 (pad=1) + BN2 + ReLU: dx taps via shift + zero-fill on the W axis,
    #      lane-concat to K=3C, then 3 matmuls (one per ky) -----------------------------
    zcol = jnp.zeros((TH + 2, 1, C), bf)
    tap0 = jnp.concatenate([zcol, y1[:, :W - 1, :]], axis=1)    # kx = 0  (column w-1)
    tap2 = jnp.concatenate([y1[:, 1:, :], zcol], axis=1)        # kx = 2  (column w+1)
    y3c = jnp.concatenate([tap0, y1, tap2], axis=-1)            # (TH+2, W, 3C) bf16

    w2 = w2_ref[...]                                            # (3, 3C, C) bf16
    acc = jnp.dot(y3c[0:TH].reshape(TH * W, 3 * C), w2[0],
                  preferred_element_type=jnp.float32)
    acc = acc + jnp.dot(y3c[1:TH + 1].reshape(TH * W, 3 * C), w2[1],
                        preferred_element_type=jnp.float32)
    acc = acc + jnp.dot(y3c[2:TH + 2].reshape(TH * W, 3 * C), w2[2],
                        preferred_element_type=jnp.float32)
    # TODO(synk): for very large row tiles, chunk the TH*W dim with
    # lax.fori_loop(..., unroll=True) to bound f32 live ranges / VMEM spill.
    y2 = jnp.maximum(acc + b2_ref[...], 0.0)

    # ---- conv1x1 + BN3, identity residual (original-dtype x, not bf16), final ReLU ----
    y3 = jnp.dot(y2.astype(bf), w3_ref[...], preferred_element_type=jnp.float32)
    y3 = y3 + b3_ref[...]
    out = jnp.maximum(y3 + xm.reshape(TH * W, C).astype(jnp.float32), 0.0)
    o_ref[...] = out.reshape(1, TH, W, C).astype(o_ref.dtype)


def _fold_bn(gamma, beta, mean, var, eps=_EPS):
    s = gamma / jnp.sqrt(var + eps)
    return s.astype(jnp.float32), (beta - mean * s).astype(jnp.float32)


def _vmem_limit_bytes():
    # ~48 MiB on v7x (64 MiB/TC physical), ~96 MiB on v5e/v6e (128 MiB physical).
    try:
        cap = int(pltpu.get_tpu_info().vmem_capacity_bytes)
    except Exception:
        cap = 64 * 1024 * 1024
    return int(min(cap * 3 // 4, 96 * 1024 * 1024))


def _auto_tile_h(N, H, W, C, in_bytes):
    """Largest row-tile whose per-step footprint fits a conservative VMEM budget."""
    budget = 6 * 1024 * 1024
    per_row = W * C * (2 * in_bytes      # input tile (double-buffered)
                       + 2 * 4           # f32 output tile (double-buffered)
                       + 12 * 4)         # f32/bf16 intermediates (y1, y3c, acc, ...)
    divs = [d for d in range(1, H + 1) if H % d == 0]
    best = 1
    for d in divs:
        if d * per_row <= budget:
            best = d
    if N == 1 and best >= H and H > 1:   # keep n_h >= 2 so the grid can shard across 2 TCs (v7x)
        best = max(d for d in divs if d < H)
    return best


def residual_block_nhwc(x, conv1_w, conv2_w, conv3_w, bn1, bn2, bn3,
                        *, tile_h=None, out_dtype=jnp.float32):
    """x: (N, H, W, Cin) NHWC. conv*_w in PyTorch OIHW layout. bn* = (gamma, beta, mean, var)."""
    N, H, W, Cin = x.shape
    C = conv1_w.shape[0]
    assert Cin == C, "downsample=None requires in_channels == out_channels"

    th = tile_h if tile_h is not None else _auto_tile_h(N, H, W, C, x.dtype.itemsize)
    th = min(th, H)
    assert H % th == 0, "H must be divisible by the row-tile size"
    n_h = H // th

    # --- BN folded: scale into bf16 weights, per-channel f32 bias kept separate ---------
    s1, b1 = _fold_bn(*bn1)
    s2, b2 = _fold_bn(*bn2)
    s3, b3 = _fold_bn(*bn3)
    w1 = (jnp.transpose(conv1_w[:, :, 0, 0], (1, 0)) * s1).astype(jnp.bfloat16)      # (Cin, C)
    w2 = (jnp.transpose(conv2_w, (2, 3, 1, 0)).reshape(3, 3 * C, C) * s2
          ).astype(jnp.bfloat16)                                                      # (3, 3C, C)
    w3 = (jnp.transpose(conv3_w[:, :, 0, 0], (1, 0)) * s3).astype(jnp.bfloat16)      # (C, C)
    b1, b2, b3 = b1.reshape(1, C), b2.reshape(1, C), b3.reshape(1, C)

    # --- tiny halo side-input (row above / below each tile) from the UN-padded input ----
    # Boundary values are never used: the kernel zero-masks halo rows outside the image.
    above = jnp.concatenate([x[:, :1], x[:, th - 1:H - 1:th]], axis=1)     # (N, n_h, W, Cin)
    below = jnp.concatenate([x[:, th:H:th], x[:, H - 1:H]], axis=1)        # (N, n_h, W, Cin)
    halo = jnp.stack([above, below], axis=2).reshape(N, 2 * n_h, W, Cin)   # (N, 2*n_h, W, Cin)

    def full(shape):
        nd = len(shape)
        return pl.BlockSpec(shape, lambda *_: (0,) * nd)

    out = pl.pallas_call(
        residual_block_kernel,
        out_shape=jax.ShapeDtypeStruct((N, H, W, C), out_dtype),
        grid=(N, n_h),
        in_specs=[
            pl.BlockSpec((1, th, W, Cin), lambda n, hh: (n, hh, 0, 0)),     # tile rows
            pl.BlockSpec((1, 2, W, Cin), lambda n, hh: (n, hh, 0, 0)),      # 2 halo rows
            full((Cin, C)),
            full((3, 3 * C, C)),
            full((C, C)),
            full((1, C)), full((1, C)), full((1, C)),
        ],
        out_specs=pl.BlockSpec((1, th, W, C), lambda n, hh: (n, hh, 0, 0)),
        compiler_params=pltpu.CompilerParams(
            dimension_semantics=("parallel", "parallel"),
            vmem_limit_bytes=_vmem_limit_bytes()),
    )(x, halo, w1, w2, w3, b1, b2, b3)
    return out


def residual_block(x_nchw, conv1_w, conv2_w, conv3_w, bn1, bn2, bn3,
                   *, tile_h=None, out_dtype=jnp.float32):
    """NCHW adapter matching the PyTorch module. Prefer residual_block_nhwc in a model
    that stays NHWC end-to-end (removes the bracketing HBM transpose passes)."""
    x = jnp.transpose(x_nchw, (0, 2, 3, 1))
    out = residual_block_nhwc(x, conv1_w, conv2_w, conv3_w, bn1, bn2, bn3,
                              tile_h=tile_h, out_dtype=out_dtype)
    return jnp.transpose(out, (0, 3, 1, 2))


# ----------------------------- pure-JAX reference ------------------------------
def _bn_ref(x, gamma, beta, mean, var, eps=_EPS):
    g = gamma.reshape(1, -1, 1, 1)
    b = beta.reshape(1, -1, 1, 1)
    m = mean.reshape(1, -1, 1, 1)
    v = var.reshape(1, -1, 1, 1)
    return (x - m) / jnp.sqrt(v + eps) * g + b


def reference_nchw(x, conv1_w, conv2_w, conv3_w, bn1, bn2, bn3):
    dn = ("NCHW", "OIHW", "NCHW")
    y = lax.conv_general_dilated(x, conv1_w, (1, 1), "VALID",
                                 dimension_numbers=dn, precision=_PREC)
    y = jnp.maximum(_bn_ref(y, *bn1), 0.0)
    y = lax.conv_general_dilated(y, conv2_w, (1, 1), ((1, 1), (1, 1)),
                                 dimension_numbers=dn, precision=_PREC)
    y = jnp.maximum(_bn_ref(y, *bn2), 0.0)
    y = lax.conv_general_dilated(y, conv3_w, (1, 1), "VALID",
                                 dimension_numbers=dn, precision=_PREC)
    y = _bn_ref(y, *bn3)
    return jnp.maximum(y + x, 0.0)


if __name__ == "__main__":
    key = jax.random.PRNGKey(0)
    N, Cin, H, W = 2, 4, 16, 16
    Cout = Cin  # downsample=None -> identity residual -> channels must match

    ks = jax.random.split(key, 7)
    conv1_w = 0.30 * jax.random.normal(ks[0], (Cout, Cin, 1, 1), jnp.float32)
    conv2_w = 0.15 * jax.random.normal(ks[1], (Cout, Cout, 3, 3), jnp.float32)
    conv3_w = 0.30 * jax.random.normal(ks[2], (Cout, Cout, 1, 1), jnp.float32)

    def bn_params(k):
        k1, k2, k3, k4 = jax.random.split(k, 4)
        gamma = 1.0 + 0.1 * jax.random.normal(k1, (Cout,), jnp.float32)
        beta = 0.1 * jax.random.normal(k2, (Cout,), jnp.float32)
        mean = 0.1 * jax.random.normal(k3, (Cout,), jnp.float32)
        var = 1.0 + 0.1 * jax.random.uniform(k4, (Cout,), jnp.float32)
        return gamma, beta, mean, var

    bn1 = bn_params(ks[3])
    bn2 = bn_params(ks[4])
    bn3 = bn_params(ks[5])

    x = jax.random.normal(ks[6], (N, Cin, H, W), jnp.float32)

    # tile_h=8 -> n_h=2, exercising the interior-halo path as well as the boundary masks.
    out = residual_block(x, conv1_w, conv2_w, conv3_w, bn1, bn2, bn3, tile_h=8)
    out = jax.block_until_ready(out)

    ref = jax.block_until_ready(
        reference_nchw(x, conv1_w, conv2_w, conv3_w, bn1, bn2, bn3))

    assert out.shape == (N, Cout, H, W)
    # bf16 MXU operands with f32 accumulation (residual path is exact f32).
    assert jnp.allclose(out, ref, atol=2e-2, rtol=2e-2), (
        f"max abs err = {jnp.max(jnp.abs(out - ref))}")
    print("KERNEL_OK")
</pallas_src>

<mosaic_0001>
module attributes {stable_mosaic.version = 11 : i64} {
  func.func @residual_block_kernel(%arg0: i32, %arg1: i32, %arg2: memref<1x8x16x4xf32, #tpu.memory_space<vmem>>, %arg3: memref<1x2x16x4xf32, #tpu.memory_space<vmem>>, %arg4: memref<4x4xbf16, #tpu.memory_space<vmem>>, %arg5: memref<3x12x4xbf16, #tpu.memory_space<vmem>>, %arg6: memref<4x4xbf16, #tpu.memory_space<vmem>>, %arg7: memref<1x4xf32, #tpu.memory_space<vmem>>, %arg8: memref<1x4xf32, #tpu.memory_space<vmem>>, %arg9: memref<1x4xf32, #tpu.memory_space<vmem>>, %arg10: memref<1x8x16x4xf32, #tpu.memory_space<vmem>>) attributes {dimension_semantics = [#tpu.dimension_semantics<parallel>, #tpu.dimension_semantics<parallel>], iteration_bounds = array<i64: 2, 2>, scalar_prefetch = 0 : i64, scratch_operands = 0 : i64, tpu.core_type = #tpu.core_type<tc>, window_params = [{transform_indices = @transform_0, window_bounds = array<i64: 1, 8, 16, 4>}, {transform_indices = @transform_1, window_bounds = array<i64: 1, 2, 16, 4>}, {pipeline_mode = #tpu.pipeline_mode<synchronous>, transform_indices = @transform_2, window_bounds = array<i64: 4, 4>}, {pipeline_mode = #tpu.pipeline_mode<synchronous>, transform_indices = @transform_3, window_bounds = array<i64: 3, 12, 4>}, {pipeline_mode = #tpu.pipeline_mode<synchronous>, transform_indices = @transform_4, window_bounds = array<i64: 4, 4>}, {pipeline_mode = #tpu.pipeline_mode<synchronous>, transform_indices = @transform_5, window_bounds = array<i64: 1, 4>}, {pipeline_mode = #tpu.pipeline_mode<synchronous>, transform_indices = @transform_6, window_bounds = array<i64: 1, 4>}, {pipeline_mode = #tpu.pipeline_mode<synchronous>, transform_indices = @transform_7, window_bounds = array<i64: 1, 4>}, {transform_indices = @transform_8, window_bounds = array<i64: 1, 8, 16, 4>}]} {
    %c0 = arith.constant 0 : index
    %c0_0 = arith.constant 0 : index
    %c0_1 = arith.constant 0 : index
    %c0_2 = arith.constant 0 : index
    %0 = vector.load %arg2[%c0, %c0_0, %c0_1, %c0_2] : memref<1x8x16x4xf32, #tpu.memory_space<vmem>>, vector<1x8x16x4xf32>
    %1 = vector.shape_cast %0 : vector<1x8x16x4xf32> to vector<8x16x4xf32>
    %c0_3 = arith.constant 0 : index
    %c0_4 = arith.constant 0 : index
    %c0_5 = arith.constant 0 : index
    %c0_6 = arith.constant 0 : index
    %2 = vector.load %arg3[%c0_3, %c0_4, %c0_5, %c0_6] : memref<1x2x16x4xf32, #tpu.memory_space<vmem>>, vector<1x2x16x4xf32>
    %3 = vector.shape_cast %2 : vector<1x2x16x4xf32> to vector<2x16x4xf32>
    %4 = vector.extract_strided_slice %3 {offsets = [0, 0, 0], sizes = [1, 16, 4], strides = [1, 1, 1]} : vector<2x16x4xf32> to vector<1x16x4xf32>
    %5 = arith.truncf %4 : vector<1x16x4xf32> to vector<1x16x4xbf16>
    %6 = arith.truncf %1 : vector<8x16x4xf32> to vector<8x16x4xbf16>
    %7 = vector.extract_strided_slice %3 {offsets = [1, 0, 0], sizes = [1, 16, 4], strides = [1, 1, 1]} : vector<2x16x4xf32> to vector<1x16x4xf32>
    %8 = arith.truncf %7 : vector<1x16x4xf32> to vector<1x16x4xbf16>
    %9 = tpu.concatenate %5, %6, %8 in 0 : vector<1x16x4xbf16>, vector<8x16x4xbf16>, vector<1x16x4xbf16> -> vector<10x16x4xbf16>
    %10 = vector.shape_cast %9 : vector<10x16x4xbf16> to vector<160x4xbf16>
    %c0_7 = arith.constant 0 : index
    %c0_8 = arith.constant 0 : index
    %11 = vector.load %arg4[%c0_7, %c0_8] : memref<4x4xbf16, #tpu.memory_space<vmem>>, vector<4x4xbf16>
    %cst = arith.constant dense<0.000000e+00> : vector<160x4xf32>
    %12 = tpu.matmul %10, %11, %cst {dimension_numbers = #tpu.dot_dimension_numbers<[1], [0], [0], [1], [0, 0, 1, 1], [], []>} : vector<160x4xbf16>, vector<4x4xbf16>, vector<160x4xf32> -> vector<160x4xf32>
    %c0_9 = arith.constant 0 : index
    %c0_10 = arith.constant 0 : index
    %13 = vector.load %arg7[%c0_9, %c0_10] : memref<1x4xf32, #tpu.memory_space<vmem>>, vector<1x4xf32>
    %14 = vector.broadcast %13 : vector<1x4xf32> to vector<160x4xf32>
    %15 = arith.addf %12, %14 : vector<160x4xf32>
    %cst_11 = arith.constant 0.000000e+00 : f32
    %16 = vector.broadcast %cst_11 : f32 to vector<160x4xf32>
    %17 = arith.maximumf %15, %16 : vector<160x4xf32>
    %18 = tpu.iota {dimensions = array<i32: 0>} : vector<160x1xi32>
    %c16_i32 = arith.constant 16 : i32
    %19 = vector.broadcast %c16_i32 : i32 to vector<160x1xi32>
    %20 = arith.cmpi sge, %18, %19 : vector<160x1xi32>
    %c0_i32 = arith.constant 0 : i32
    %21 = arith.cmpi sgt, %arg1, %c0_i32 : i32
    %22 = vector.broadcast %21 : i1 to vector<160x1xi1>
    %23 = arith.ori %20, %22 : vector<160x1xi1>
    %c144_i32 = arith.constant 144 : i32
    %24 = vector.broadcast %c144_i32 : i32 to vector<160x1xi32>
    %25 = arith.cmpi slt, %18, %24 : vector<160x1xi32>
    %c1_i32 = arith.constant 1 : i32
    %26 = arith.cmpi slt, %arg1, %c1_i32 : i32
    %27 = vector.broadcast %26 : i1 to vector<160x1xi1>
    %28 = arith.ori %25, %27 : vector<160x1xi1>
    %29 = arith.andi %23, %28 : vector<160x1xi1>
    %cst_12 = arith.constant 0.000000e+00 : f32
    %30 = vector.shape_cast %29 : vector<160x1xi1> to vector<160x1xi1>
    %31 = vector.broadcast %30 : vector<160x1xi1> to vector<160x4xi1>
    %32 = vector.broadcast %cst_12 : f32 to vector<160x4xf32>
    %33 = arith.select %31, %17, %32 : vector<160x4xi1>, vector<160x4xf32>
    %34 = arith.truncf %33 : vector<160x4xf32> to vector<160x4xbf16>
    %35 = vector.shape_cast %34 : vector<160x4xbf16> to vector<10x16x4xbf16>
    %cst_13 = arith.constant 0.000000e+00 : bf16
    %36 = vector.broadcast %cst_13 : bf16 to vector<10x1x4xbf16>
    %37 = vector.extract_strided_slice %35 {offsets = [0, 0, 0], sizes = [10, 15, 4], strides = [1, 1, 1]} : vector<10x16x4xbf16> to vector<10x15x4xbf16>
    %38 = tpu.concatenate %36, %37 in 1 : vector<10x1x4xbf16>, vector<10x15x4xbf16> -> vector<10x16x4xbf16>
    %39 = vector.extract_strided_slice %35 {offsets = [0, 1, 0], sizes = [10, 15, 4], strides = [1, 1, 1]} : vector<10x16x4xbf16> to vector<10x15x4xbf16>
    %40 = tpu.concatenate %39, %36 in 1 : vector<10x15x4xbf16>, vector<10x1x4xbf16> -> vector<10x16x4xbf16>
    %41 = tpu.concatenate %38, %35, %40 in 2 : vector<10x16x4xbf16>, vector<10x16x4xbf16>, vector<10x16x4xbf16> -> vector<10x16x12xbf16>
    %c0_14 = arith.constant 0 : index
    %c0_15 = arith.constant 0 : index
    %c0_16 = arith.constant 0 : index
    %42 = vector.load %arg5[%c0_14, %c0_15, %c0_16] : memref<3x12x4xbf16, #tpu.memory_space<vmem>>, vector<3x12x4xbf16>
    %43 = vector.extract_strided_slice %41 {offsets = [0, 0, 0], sizes = [8, 16, 12], strides = [1, 1, 1]} : vector<10x16x12xbf16> to vector<8x16x12xbf16>
    %44 = vector.shape_cast %43 : vector<8x16x12xbf16> to vector<128x12xbf16>
    %45 = vector.extract_strided_slice %42 {offsets = [0, 0, 0], sizes = [1, 12, 4], strides = [1, 1, 1]} : vector<3x12x4xbf16> to vector<1x12x4xbf16>
    %46 = vector.shape_cast %45 : vector<1x12x4xbf16> to vector<12x4xbf16>
    %cst_17 = arith.constant dense<0.000000e+00> : vector<128x4xf32>
    %47 = tpu.matmul %44, %46, %cst_17 {dimension_numbers = #tpu.dot_dimension_numbers<[1], [0], [0], [1], [0, 0, 1, 1], [], []>} : vector<128x12xbf16>, vector<12x4xbf16>, vector<128x4xf32> -> vector<128x4xf32>
    %48 = vector.extract_strided_slice %41 {offsets = [1, 0, 0], sizes = [8, 16, 12], strides = [1, 1, 1]} : vector<10x16x12xbf16> to vector<8x16x12xbf16>
    %49 = vector.shape_cast %48 : vector<8x16x12xbf16> to vector<128x12xbf16>
    %50 = vector.extract_strided_slice %42 {offsets = [1, 0, 0], sizes = [1, 12, 4], strides = [1, 1, 1]} : vector<3x12x4xbf16> to vector<1x12x4xbf16>
    %51 = vector.shape_cast %50 : vector<1x12x4xbf16> to vector<12x4xbf16>
    %cst_18 = arith.constant dense<0.000000e+00> : vector<128x4xf32>
    %52 = tpu.matmul %49, %51, %cst_18 {dimension_numbers = #tpu.dot_dimension_numbers<[1], [0], [0], [1], [0, 0, 1, 1], [], []>} : vector<128x12xbf16>, vector<12x4xbf16>, vector<128x4xf32> -> vector<128x4xf32>
    %53 = arith.addf %47, %52 : vector<128x4xf32>
    %54 = vector.extract_strided_slice %41 {offsets = [2, 0, 0], sizes = [8, 16, 12], strides = [1, 1, 1]} : vector<10x16x12xbf16> to vector<8x16x12xbf16>
    %55 = vector.shape_cast %54 : vector<8x16x12xbf16> to vector<128x12xbf16>
    %56 = vector.extract_strided_slice %42 {offsets = [2, 0, 0], sizes = [1, 12, 4], strides = [1, 1, 1]} : vector<3x12x4xbf16> to vector<1x12x4xbf16>
    %57 = vector.shape_cast %56 : vector<1x12x4xbf16> to vector<12x4xbf16>
    %cst_19 = arith.constant dense<0.000000e+00> : vector<128x4xf32>
    %58 = tpu.matmul %55, %57, %cst_19 {dimension_numbers = #tpu.dot_dimension_numbers<[1], [0], [0], [1], [0, 0, 1, 1], [], []>} : vector<128x12xbf16>, vector<12x4xbf16>, vector<128x4xf32> -> vector<128x4xf32>
    %59 = arith.addf %53, %58 : vector<128x4xf32>
    %c0_20 = arith.constant 0 : index
    %c0_21 = arith.constant 0 : index
    %60 = vector.load %arg8[%c0_20, %c0_21] : memref<1x4xf32, #tpu.memory_space<vmem>>, vector<1x4xf32>
    %61 = vector.broadcast %60 : vector<1x4xf32> to vector<128x4xf32>
    %62 = arith.addf %59, %61 : vector<128x4xf32>
    %cst_22 = arith.constant 0.000000e+00 : f32
    %63 = vector.broadcast %cst_22 : f32 to vector<128x4xf32>
    %64 = arith.maximumf %62, %63 : vector<128x4xf32>
    %65 = arith.truncf %64 : vector<128x4xf32> to vector<128x4xbf16>
    %c0_23 = arith.constant 0 : index
    %c0_24 = arith.constant 0 : index
    %66 = vector.load %arg6[%c0_23, %c0_24] : memref<4x4xbf16, #tpu.memory_space<vmem>>, vector<4x4xbf16>
    %cst_25 = arith.constant dense<0.000000e+00> : vector<128x4xf32>
    %67 = tpu.matmul %65, %66, %cst_25 {dimension_numbers = #tpu.dot_dimension_numbers<[1], [0], [0], [1], [0, 0, 1, 1], [], []>} : vector<128x4xbf16>, vector<4x4xbf16>, vector<128x4xf32> -> vector<128x4xf32>
    %c0_26 = arith.constant 0 : index
    %c0_27 = arith.constant 0 : index
    %68 = vector.load %arg9[%c0_26, %c0_27] : memref<1x4xf32, #tpu.memory_space<vmem>>, vector<1x4xf32>
    %69 = vector.broadcast %68 : vector<1x4xf32> to vector<128x4xf32>
    %70 = arith.addf %67, %69 : vector<128x4xf32>
    %71 = vector.shape_cast %1 : vector<8x16x4xf32> to vector<128x4xf32>
    %72 = arith.addf %70, %71 : vector<128x4xf32>
    %cst_28 = arith.constant 0.000000e+00 : f32
    %73 = vector.broadcast %cst_28 : f32 to vector<128x4xf32>
    %74 = arith.maximumf %72, %73 : vector<128x4xf32>
    %75 = vector.shape_cast %74 : vector<128x4xf32> to vector<1x8x16x4xf32>
    %c0_29 = arith.constant 0 : index
    %c0_30 = arith.constant 0 : index
    %c0_31 = arith.constant 0 : index
    %c0_32 = arith.constant 0 : index
    %76 = vector.load %arg10[%c0_29, %c0_30, %c0_31, %c0_32] : memref<1x8x16x4xf32, #tpu.memory_space<vmem>>, vector<1x8x16x4xf32>
    tpu.vector_store %arg10[%c0_29, %c0_30, %c0_31, %c0_32], %75 {strides = array<i32>} : memref<1x8x16x4xf32, #tpu.memory_space<vmem>>, vector<1x8x16x4xf32>,
    return
  }
  func.func @transform_0(%arg0: i32, %arg1: i32) -> (i32, i32, i32, i32) {
    %c0_i32 = arith.constant 0 : i32
    %c0_i32_0 = arith.constant 0 : i32
    %c0_i32_1 = arith.constant 0 : i32
    return %arg0, %arg1, %c0_i32, %c0_i32_0 : i32, i32, i32, i32
  }
  func.func @transform_1(%arg0: i32, %arg1: i32) -> (i32, i32, i32, i32) {
    %c0_i32 = arith.constant 0 : i32
    %c0_i32_0 = arith.constant 0 : i32
    %c0_i32_1 = arith.constant 0 : i32
    return %arg0, %arg1, %c0_i32, %c0_i32_0 : i32, i32, i32, i32
  }
  func.func @transform_2(%arg0: i32, %arg1: i32) -> (i32, i32) {
    %c0_i32 = arith.constant 0 : i32
    %c0_i32_0 = arith.constant 0 : i32
    %c0_i32_1 = arith.constant 0 : i32
    return %c0_i32, %c0_i32_0 : i32, i32
  }
  func.func @transform_3(%arg0: i32, %arg1: i32) -> (i32, i32, i32) {
    %c0_i32 = arith.constant 0 : i32
    %c0_i32_0 = arith.constant 0 : i32
    %c0_i32_1 = arith.constant 0 : i32
    %c0_i32_2 = arith.constant 0 : i32
    return %c0_i32, %c0_i32_0, %c0_i32_1 : i32, i32, i32
  }
  func.func @transform_4(%arg0: i32, %arg1: i32) -> (i32, i32) {
    %c0_i32 = arith.constant 0 : i32
    %c0_i32_0 = arith.constant 0 : i32
    %c0_i32_1 = arith.constant 0 : i32
    return %c0_i32, %c0_i32_0 : i32, i32
  }
  func.func @transform_5(%arg0: i32, %arg1: i32) -> (i32, i32) {
    %c0_i32 = arith.constant 0 : i32
    %c0_i32_0 = arith.constant 0 : i32
    %c0_i32_1 = arith.constant 0 : i32
    return %c0_i32, %c0_i32_0 : i32, i32
  }
  func.func @transform_6(%arg0: i32, %arg1: i32) -> (i32, i32) {
    %c0_i32 = arith.constant 0 : i32
    %c0_i32_0 = arith.constant 0 : i32
    %c0_i32_1 = arith.constant 0 : i32
    return %c0_i32, %c0_i32_0 : i32, i32
  }
  func.func @transform_7(%arg0: i32, %arg1: i32) -> (i32, i32) {
    %c0_i32 = arith.constant 0 : i32
    %c0_i32_0 = arith.constant 0 : i32
    %c0_i32_1 = arith.constant 0 : i32
    return %c0_i32, %c0_i32_0 : i32, i32
  }
  func.func @transform_8(%arg0: i32, %arg1: i32) -> (i32, i32, i32, i32) {
    %c0_i32 = arith.constant 0 : i32
    %c0_i32_0 = arith.constant 0 : i32
    %c0_i32_1 = arith.constant 0 : i32
    return %arg0, %arg1, %c0_i32, %c0_i32_0 : i32, i32, i32, i32
  }
}

</mosaic_0001>

<bundles_post_ra>
// kernel: tpu_custom_call.1
= control target key start
LH: loop header
LB: loop body
LE: loop exit
PB: predicated region body
PF: predicated region fallthrough
CT: control target
= control target key end

     0   :  { %s2128_s27 = smov 0   ;;  %s2130_s28 = smov 0   ;;  %s2610_s0 = inlined_call_operand.vmem [shape: f32[2,16,16,4], index: 0, kind: input, shape index: {}]   ;;  %s2611_s1 = inlined_call_operand.vmem [shape: f32[2,4,16,4], index: 1, kind: input, shape index: {}]   ;;  %s2612_s2 = inlined_call_operand.vmem [shape: bf16[4,4], index: 2, kind: input, shape index: {}]   ;;  %s2613_s3 = inlined_call_operand.vmem [shape: bf16[3,12,4], index: 3, kind: input, shape index: {}]   ;;  %s2614_s4 = inlined_call_operand.vmem [shape: bf16[4,4], index: 4, kind: input, shape index: {}]   ;;  %s2615_s5 = inlined_call_operand.vmem [shape: f32[1,4], index: 5, kind: input, shape index: {}]   ;;  %s2616_s6 = inlined_call_operand.vmem [shape: f32[1,4], index: 6, kind: input, shape index: {}]   ;;  %s2617_s7 = inlined_call_operand.vmem [shape: f32[1,4], index: 7, kind: input, shape index: {}]   ;;  %s2618_s8 = inlined_call_operand.vmem [shape: f32[2,16,16,4], index: 8, kind: output, shape index: {}]  }
   0x1   :  { %s2132_s29 = smov 0   ;;  %s2134_s30 = smov 0  }
   0x2   :  { %s2136_s9 = smov 0  }
   0x3 LB: > { %s27_s10 = sadd.s32 1, %s2071_s29  ;;  %s30_s11 = sadd.s32 1, %s2075_s30  ;;  %s2079_s9 = sphi %s2136_s9, %s18_s9   ;;  %s2075_s30 = sphi %s2134_s30, %s2626_s30   ;;  %s2071_s29 = sphi %s2132_s29, %s2625_s29   ;;  %s2067_s28 = sphi %s2130_s28, %s2624_s28   ;;  %s2063_s27 = sphi %s2128_s27, %s2623_s27  }
   0x4   : > { %p28_p0 = scmp.ge.s32.totalorder %s27_s10, 2  ;;  %p1752_p1 = scmp.ge.s32.totalorder %s2079_s9, 1 }
   0x5   : > { %p302_p2 = scmp.lt.s32.totalorder %s2079_s9, 5 }
   0x6   : > { %s2628_s10 = smov (%p28_p0, %s27_s10), 0  ;;  %s2630_s11 = smov (!%p28_p0, %s30_s11), %s2075_s30 }
   0x7   : > { %p303_p3 = pnand %p1752_p1, %p302_p2  ;;  %p32_p4 = scmp.ge.s32.totalorder %s2630_s11, 2 }
   0x8   : > { %v420_v0 = vld [vmem:[%s2612_s2] sm:$0x3] (!%p303_p3)  ;;  %vm459_vm0 = vcmask (!%p303_p3), 1041408   ;;  %s1753_s14 = sshll.u32 (!%p303_p3), %s2063_s27, 3  ;;  %p357_p5 = scmp.lt.s32.totalorder (!%p303_p3), %s2067_s28, 1  ;;  %vm428_vm1 = vcmask (!%p303_p3), 31744  }
   0x9   : > { %s2632_s11 = smov (%p32_p4, %s2630_s11), 0  ;;  %306 = sbr.rel (%p303_p3) target bundleno = 914 (0x392), region = 52 }
   0xa   : > { %1990 = vmatprep.subr.msk.bf16.mxu0 (!%p303_p3), %vm459_vm0, %v420_v0  ;;  %v461_v1 = vsel (!%p303_p3), %vm459_vm0, %v420_v0, 0  ;;  %p359_p6 = scmp.lt.s32.totalorder (!%p303_p3), %s1753_s14, 15  ;;  %s1757_s15 = sshll.u32 (!%p303_p3), %s2063_s27, 1  ;;  %v2264_v32 = vld [vmem:[%s2615_s5] ss:$0 sm:$0xff] (!%p303_p3)  ;;  %vm1070_vm3 = vcmask (!%p303_p3), 1045504  }
   0xb   : > { %1863 = vmatpush3.bf16.msra.mxu0 (!%p303_p3), %v461_v1  ;;  %p370_p7 = scmp.lt.s32.totalorder (!%p303_p3), %s1757_s15, 3  ;;  %p637_p8 = scmp.gt.s32.totalorder (!%p303_p3), %s2063_s27, 0  ;;  %vm918_vm4 = vcmask (!%p303_p3), 1047552   ;;  %vm919_vm5 = vsmask.f32 (!%p303_p3), 7424  ;;  %vm875_vm8 = vcmask (!%p303_p3), 1040384  }
   0xc   : > { %s2081_s21 = smov (!%p303_p3), 4   ;;  %vm2319_vm6 = vmand (!%p303_p3), %vm918_vm4, %vm919_vm5  ;;  %p681_p9 = scmp.lt.s32.totalorder (!%p303_p3), %s2063_s27, 1  ;;  %vm876_vm9 = vsmask.f32 (!%p303_p3), 256  ;;  %vm1021_vm11 = vcmask (!%p303_p3), 64512   ;;  %vm1053_vm12 = vcmask (!%p303_p3), 97280  }
   0xd   : > { %vm2381_vm10 = vmand (!%p303_p3), %vm875_vm8, %vm876_vm9 }
  0x10   : > { %s2634_s28 = smov (!%p357_p5, %s2067_s28), 1  ;;  %s2636_s14 = smov (!%p359_p6, %s1753_s14), 15 }
  0x11   : > { %s1755_s16 = sshll.u32 %s2634_s28, 5  ;;  %s1754_s17 = sshll.u32 %s2636_s14, 1 }
  0x12   : > { %s2167_s18 = sadd.s32 %s1755_s16, %s1754_s17  ;;  %s1759_s23 = sshll.u32 %s2634_s28, 3 }
  0x13   : > { %s1756_s19 = sshll.u32 %s2167_s18, 3  ;;  %s2638_s15 = smov (!%p370_p7, %s1757_s15), 3 }
  0x14   : > { %s2175_s22 = scalar_lea.vmem %s2610_s0, %s1756_s19  ;;  %s1758_s24 = sshll.u32 %s2638_s15, 1 }
  0x15   : > { %s374_s25 = sadd.s32 %s1759_s23, %s1758_s24  ;;  %v2178_v2 = vld [vmem:[%s2175_s22] sm:$0xff]  ;;  %v2181_v3 = vld [vmem:[%s2175_s22 + $0x8] sm:$0xff]  ;;  %v2184_v4 = vld [vmem:[%s2175_s22 + $0x10] sm:$0xff]  ;;  %s2082_s24 = smov 8  }
  0x16   : > { %s1760_s26 = sshll.u32 %s374_s25, 3  ;;  %v2187_v5 = vld [vmem:[%s2175_s22 + $0x18] sm:$0xff]  ;;  %v411_v8 = vpack.c.bf16 %v2181_v3, %v2178_v2  ;;  %v2204_v11 = vld [vmem:[%s2175_s22 + $0x20] sm:$0xff]  ;;  %v2207_v12 = vld [vmem:[%s2175_s22 + $0x28] sm:$0xff] }
  0x17   : > { %s2192_s28 = scalar_lea.vmem %s2611_s1, %s1760_s26  ;;  %v412_v10 = vpack.c.bf16 %v2187_v5, %v2184_v4  ;;  %v2210_v13 = vld [vmem:[%s2175_s22 + $0x30] sm:$0xff]  ;;  %v2213_v14 = vld [vmem:[%s2175_s22 + $0x38] sm:$0xff]  ;;  %v413_v15 = vpack.c.bf16 %v2207_v12, %v2204_v11  ;;  %v2222_v17 = vld [vmem:[%s2175_s22 + $0x40] sm:$0xff] }
  0x18   : > { %v406_v6 = vld [vmem:[%s2192_s28] sm:$0xff]  ;;  %v407_v7 = vld [vmem:[%s2192_s28 + $0x8] sm:$0xff]  ;;  %v414_v16 = vpack.c.bf16 %v2213_v14, %v2210_v13  ;;  %v2228_v19 = vld [vmem:[%s2175_s22 + $0x50] sm:$0xff]  ;;  %s638_s16 = scalar_select %p637_p8, 1, 0 }
  0x19   : > { %v410_v9 = vpack.c.bf16 %v407_v7, %v406_v6  ;;  %v2225_v18 = vld [vmem:[%s2175_s22 + $0x48] sm:$0xff]  ;;  %v2231_v20 = vld [vmem:[%s2175_s22 + $0x58] sm:$0xff]  ;;  %v2240_v23 = vld [vmem:[%s2175_s22 + $0x60] sm:$0xff]  ;;  %s2340_s25 = scalar_select %p681_p9, 1, 0 }
  0x1a   : > { %v415_v21 = vpack.c.bf16 %v2225_v18, %v2222_v17  ;;  %v416_v22 = vpack.c.bf16 %v2231_v20, %v2228_v19  ;;  %v2243_v24 = vld [vmem:[%s2175_s22 + $0x68] sm:$0xff]  ;;  %v2246_v25 = vld [vmem:[%s2175_s22 + $0x70] sm:$0xff]  ;;  %v2249_v26 = vld [vmem:[%s2175_s22 + $0x78] sm:$0xff]  ;;  %v639_v37 = vstv %s638_s16 }
  0x1b   : > { %1864 = vmatprep.mubr.msk.bf16.mxu0 %vm428_vm1, %v410_v9  ;;  %v417_v27 = vpack.c.bf16 %v2243_v24, %v2240_v23  ;;  %v418_v28 = vpack.c.bf16 %v2249_v26, %v2246_v25  ;;  %v408_v29 = vld [vmem:[%s2192_s28 + $0x10] sm:$0xff]  ;;  %v409_v30 = vld [vmem:[%s2192_s28 + $0x18] sm:$0xff]  ;;  %vm640_vm2 = vcmp.eq.s32.totalorder %v639_v37, 1  ;;  %v2038_v6 = vld [vmem:[%s2613_s3 + $0x8] sm:$0x3f]  }
  0x1c   : > { %1865 = vmatmul.mubr.msk.bf16.vlgmr.msra.gmra.mrb[0].mxu0 %vm428_vm1, %v411_v8  ;;  %v419_v31 = vpack.c.bf16 %v409_v30, %v408_v29  ;;  %1992 = vmatprep.subr.msk.bf16.mxu1 %vm1070_vm3, %v2038_v6 }
  0x1d   : > { %1868 = vmatprep.mubr.msk.bf16.mxu0 %vm428_vm1, %v412_v10  ;;  %1991 = vmatprep.subr.msk.bf16.mxu0 %vm1070_vm3, %v2038_v6 }
  0x24   : > { %1869 = vmatmul.mubr.msk.bf16.gmra.mrb[4].mxu0 %vm428_vm1, %v413_v15 }
  0x25   : > { %1872 = vmatprep.mubr.msk.bf16.mxu0 %vm428_vm1, %v414_v16 }
  0x2c   : > { %1873 = vmatmul.mubr.msk.bf16.gmra.mrb[8].mxu0 %vm428_vm1, %v415_v21 }
  0x2d   : > { %1876 = vmatprep.mubr.msk.bf16.mxu0 %vm428_vm1, %v416_v22 }
  0x34   : > { %1877 = vmatmul.mubr.msk.bf16.gmra.mrb[12].mxu0 %vm428_vm1, %v417_v27 }
  0x35   : > { %1880 = vmatprep.mubr.msk.bf16.mxu0 %vm428_vm1, %v418_v28 }
  0x3c   : > { %1881 = vmatmul.mubr.msk.bf16.gmra.mrb[16].mxu0 %vm428_vm1, %v419_v31 }
  0xef   : > { %v1866_v33 = vpop.f32.mrb[0].mxu0 }
  0xf0   : > { %v506_v34 = vadd.f32 %v1866_v33, %v2264_v32  ;;  %v497_v35 = vpop.f32.mrb[1].mxu0 }
  0xf1   : > { %v498_v36 = vadd.f32 %v2264_v32, %v497_v35  ;;  %v1867_v38 = vpop.f32.mrb[2].mxu0 }
  0xf2   : > { %v509_v39 = vadd.f32 %v1867_v38, %v2264_v32  ;;  %v500_v40 = vpop.f32.mrb[3].mxu0  ;;  %v578_v43 = vmax.f32 %v506_v34, 0.0  ;;  %v1072_v34 = vsel %vm1070_vm3, %v2038_v6, 0 }
  0xf3   : > { %v576_v41 = vmax.f32 %v498_v36, 0.0  ;;  %v501_v42 = vadd.f32 %v2264_v32, %v500_v40  ;;  %1957 = vmatpush3.bf16.msra.mxu1 %v1072_v34  ;;  %1885 = vmatpush3.bf16.msra.mxu0 %v1072_v34 }
  0xf4   : > { %v579_v44 = vmax.f32 %v509_v39, 0.0 }
  0xf5   : > { %v577_v45 = vmax.f32 %v501_v42, 0.0  ;;  %v765_v47 = vsel %vm640_vm2, %v576_v41, 0.0  ;;  %v2314_v42 = vld [vmem:[%s2613_s3] sm:$0x3f]  }
  0xf6   : > { %v2270_v46 = vpack.c.bf16 %v579_v44, %v578_v43  ;;  %1993 = vmatprep.subr.msk.bf16.mxu1 %vm1070_vm3, %v2314_v42 }
  0xf7   : > { %v766_v48 = vsel %vm640_vm2, %v577_v45, 0.0  ;;  %v1870_v49 = vpop.f32.mrb[4].mxu0 }
  0xf8   : > { %v522_v50 = vadd.f32 %v1870_v49, %v2264_v32  ;;  %v513_v51 = vpop.f32.mrb[5].mxu0  ;;  %v2273_v52 = vpack.c.bf16 %v766_v48, %v765_v47  ;;  %v803_v53 = vshrl.u32 %v2270_v46, 16  ;;  %v806_v59 = vshll.u32 %v2270_v46, 16 }
  0xf9   : > { %v514_v54 = vadd.f32 %v2264_v32, %v513_v51  ;;  %v1871_v55 = vpop.f32.mrb[6].mxu0 }
  0xfa   : > { %v525_v56 = vadd.f32 %v1871_v55, %v2264_v32  ;;  %v516_v57 = vpop.f32.mrb[7].mxu0  ;;  %v796_v58 = vshrl.u32 %v2273_v52, 16  ;;  %v805_v61 = vrot.slane %v803_v53, 7  ;;  %v582_v62 = vmax.f32 %v522_v50, 0.0 }
  0xfb   : > { %v517_v60 = vadd.f32 %v2264_v32, %v516_v57  ;;  %v799_v0 = vshll.u32 %v2273_v52, 16  ;;  %v580_v7 = vmax.f32 %v514_v54, 0.0 }
  0xfc   : > { %v583_v63 = vmax.f32 %v525_v56, 0.0  ;;  %v798_v1 = vrot.slane %v796_v58, 7  ;;  %v2291_v9 = vor.u32 %v806_v59, %v805_v61 }
  0xfd   : > { %v581_v8 = vmax.f32 %v517_v60, 0.0 }
  0xfe   : > { %v788_v10 = vpack.c.bf16 %v583_v63, %v582_v62  ;;  %v2296_v15 = vor.u32 %v799_v0, %v798_v1 }
  0xff   : > { %v2299_v16 = vpack.c.bf16 %v581_v8, %v580_v7  ;;  %v1874_v21 = vpop.f32.mrb[8].mxu0 }
 0x100   : > { %v538_v22 = vadd.f32 %v1874_v21, %v2264_v32  ;;  %947 = vrot.lane.b32.xlu0 %v788_v10, %s2081_s21  ;;  %v529_v27 = vpop.f32.mrb[9].mxu0  ;;  %v817_v28 = vshrl.u32 %v788_v10, 16  ;;  %v820_v29 = vshll.u32 %v788_v10, 16 }
 0x101   : > { %v530_v30 = vadd.f32 %v2264_v32, %v529_v27  ;;  %v1875_v31 = vpop.f32.mrb[10].mxu0  ;;  %v810_v33 = vshrl.u32 %v2299_v16, 16  ;;  %v813_v39 = vshll.u32 %v2299_v16, 16 }
 0x102   : > { %v541_v35 = vadd.f32 %v1875_v31, %v2264_v32  ;;  %v532_v36 = vpop.f32.mrb[11].mxu0  ;;  %v894_v37 = vrot.slane %v820_v29, 1  ;;  %v819_v38 = vrot.slane %v817_v28, 7  ;;  %v586_v43 = vmax.f32 %v538_v22, 0.0 }
 0x103   : > { %v533_v40 = vadd.f32 %v2264_v32, %v532_v36  ;;  %v812_v41 = vrot.slane %v810_v33, 7  ;;  %v584_v48 = vmax.f32 %v530_v30, 0.0 }
 0x104   : > { %v587_v44 = vmax.f32 %v541_v35, 0.0  ;;  %v895_v45 = vor.u32 %v894_v37, %v817_v28  ;;  %v2316_v47 = vor.u32 %v820_v29, %v819_v38 }
 0x105   : > { %v585_v49 = vmax.f32 %v533_v40, 0.0  ;;  %v2327_v51 = vor.u32 %v813_v39, %v812_v41 }
 0x106   : > { %v790_v54 = vpack.c.bf16 %v587_v44, %v586_v43  ;;  %v924_v55 = vsel %vm2319_vm6, %v895_v45, 0 }
 0x107   : > { %v789_v56 = vpack.c.bf16 %v585_v49, %v584_v48  ;;  %977 = vrot.lane.b32.xlu1 %v924_v55, %s2082_s24  ;;  %v1878_v57 = vpop.f32.mrb[12].mxu0  ;;  %v683_v48 = vstv %s2340_s25 }
 0x108   : > { %v834_v60 = vshll.u32 %v790_v54, 16  ;;  %v554_v61 = vadd.f32 %v1878_v57, %v2264_v32  ;;  %v545_v62 = vpop.f32.mrb[13].mxu0  ;;  %v831_v63 = vshrl.u32 %v790_v54, 16  ;;  %vm684_vm7 = vcmp.eq.s32.totalorder %v683_v48, 1 }
 0x109   : > { %v827_v1 = vshll.u32 %v789_v56, 16  ;;  %v546_v6 = vadd.f32 %v2264_v32, %v545_v62  ;;  %v1879_v7 = vpop.f32.mrb[14].mxu0  ;;  %949 = vrot.lane.b32.xlu0 %v789_v56, %s2081_s21  ;;  %v824_v8 = vshrl.u32 %v789_v56, 16 }
 0x10a   : > { %v557_v10 = vadd.f32 %v1879_v7, %v2264_v32  ;;  %v548_v21 = vpop.f32.mrb[15].mxu0  ;;  %v833_v22 = vrot.slane %v831_v63, 7  ;;  %v898_v27 = vrot.slane %v834_v60, 1  ;;  %v590_v31 = vmax.f32 %v554_v61, 0.0 }
 0x10b   : > { %v549_v28 = vadd.f32 %v2264_v32, %v548_v21  ;;  %v896_v29 = vrot.slane %v827_v1, 1  ;;  %v826_v30 = vrot.slane %v824_v8, 7  ;;  %v588_v37 = vmax.f32 %v546_v6, 0.0 }
 0x10c   : > { %v591_v34 = vmax.f32 %v557_v10, 0.0  ;;  %v899_v35 = vor.u32 %v898_v27, %v831_v63  ;;  %v2342_v36 = vor.u32 %v834_v60, %v833_v22 }
 0x10d   : > { %v589_v38 = vmax.f32 %v549_v28, 0.0  ;;  %951 = vrot.lane.b32.xlu0 %v790_v54, %s2081_s21  ;;  %v897_v40 = vor.u32 %v896_v29, %v824_v8  ;;  %v2345_v41 = vor.u32 %v827_v1, %v826_v30 }
 0x10e   : > { %v792_v43 = vpack.c.bf16 %v591_v34, %v590_v31  ;;  %v926_v60 = vsel %vm2319_vm6, %v899_v35, 0 }
 0x10f   : > { %v791_v44 = vpack.c.bf16 %v589_v38, %v588_v37  ;;  %v1882_v45 = vpop.f32.mrb[16].mxu0  ;;  %v925_v49 = vsel %vm2319_vm6, %v897_v40, 0 }
 0x110   : > { %v848_v55 = vshll.u32 %v792_v43, 16  ;;  %v570_v56 = vadd.f32 %v1882_v45, %v2264_v32  ;;  %v561_v57 = vpop.f32.mrb[17].mxu0  ;;  %979 = vrot.lane.b32.xlu1 %v925_v49, %s2082_s24  ;;  %v845_v54 = vshrl.u32 %v792_v43, 16 }
 0x111   : > { %v841_v61 = vshll.u32 %v791_v44, 16  ;;  %v562_v62 = vadd.f32 %v2264_v32, %v561_v57  ;;  %v1883_v63 = vpop.f32.mrb[18].mxu0  ;;  %981 = vrot.lane.b32.xlu0 %v926_v60, %s2082_s24  ;;  %v838_v1 = vshrl.u32 %v791_v44, 16 }
 0x112   : > { %v594_v6 = vmax.f32 %v570_v56, 0.0  ;;  %v573_v7 = vadd.f32 %v1883_v63, %v2264_v32  ;;  %v564_v8 = vpop.f32.mrb[19].mxu0  ;;  %v847_v10 = vrot.slane %v845_v54, 7  ;;  %v902_v21 = vrot.slane %v848_v55, 1 }
 0x113   : > { %v565_v22 = vadd.f32 %v2264_v32, %v564_v8  ;;  %v840_v27 = vrot.slane %v838_v1, 7  ;;  %v900_v28 = vrot.slane %v841_v61, 1  ;;  %v592_v34 = vmax.f32 %v562_v62, 0.0 }
 0x114   : > { %v595_v29 = vmax.f32 %v573_v7, 0.0  ;;  %953 = vrot.lane.b32.xlu1 %v791_v44, %s2081_s21  ;;  %v903_v30 = vor.u32 %v902_v21, %v845_v54  ;;  %v2359_v31 = vor.u32 %v848_v55, %v847_v10  ;;  %v783_v40 = vsel %vm684_vm7, %v594_v6, 0.0 }
 0x115   : > { %v593_v35 = vmax.f32 %v565_v22, 0.0  ;;  %955 = vrot.lane.b32.xlu0 %v792_v43, %s2081_s21  ;;  %v901_v37 = vor.u32 %v900_v28, %v838_v1  ;;  %v2362_v38 = vor.u32 %v841_v61, %v840_v27  ;;  %v888_v55 = vrot.slane %v799_v0, 1 }
 0x116   : > { %v784_v45 = vsel %vm684_vm7, %v595_v29, 0.0  ;;  %v928_v44 = vsel %vm2319_vm6, %v903_v30, 0  ;;  %v890_v10 = vrot.slane %v806_v59, 1  ;;  %v892_v22 = vrot.slane %v813_v39, 1 }
 0x117   : > { %v793_v48 = vpack.c.bf16 %v593_v35, %v592_v34  ;;  %v927_v32 = vsel %vm2319_vm6, %v901_v37, 0  ;;  %v794_v49 = vpack.c.bf16 %v784_v45, %v783_v40  ;;  %v889_v63 = vor.u32 %v888_v55, %v796_v58 }
 0x118   : > { %983 = vrot.lane.b32.xlu1 %v927_v32, %s2082_s24  ;;  %v891_v21 = vor.u32 %v890_v10, %v803_v53  ;;  %v893_v27 = vor.u32 %v892_v22, %v810_v33  ;;  %v882_v37 = vsel %vm2381_vm10, 0, %v2345_v41  ;;  %v2040_v32 = vld [vmem:[%s2613_s3 + $0x10] sm:$0x3f]   ;;  %v878_v10 = vsel %vm2381_vm10, 0, %v2296_v15 }
 0x119   : > { %v855_v56 = vshll.u32 %v793_v48, 16  ;;  %985 = vrot.lane.b32.xlu0 %v928_v44, %s2082_s24  ;;  %v852_v43 = vshrl.u32 %v793_v48, 16  ;;  %v859_v57 = vshrl.u32 %v794_v49, 16  ;;  %v862_v62 = vshll.u32 %v794_v49, 16 }
 0x11a   : > { %v922_v59 = vsel %vm2319_vm6, %v891_v21, 0  ;;  %v923_v53 = vsel %vm2319_vm6, %v893_v27, 0 }
 0x11b   : > { %v854_v60 = vrot.slane %v852_v43, 7  ;;  %v904_v54 = vrot.slane %v855_v56, 1  ;;  %v861_v61 = vrot.slane %v859_v57, 7  ;;  %v906_v28 = vrot.slane %v862_v62, 1 }
 0x11c   : > { %957 = vrot.lane.b32.xlu1 %v793_v48, %s2081_s21  ;;  %v1179_v48 = vsel %vm1070_vm3, %v2314_v42, 0 }
 0x11d   : > { %941 = vrot.lane.b32.xlu0 %v2273_v52, %s2081_s21  ;;  %v905_v0 = vor.u32 %v904_v54, %v852_v43  ;;  %v2377_v1 = vor.u32 %v855_v56, %v854_v60  ;;  %v2379_v6 = vor.u32 %v862_v62, %v861_v61  ;;  %v921_v52 = vsel %vm2319_vm6, %v889_v63, 0 }
 0x11e   : > { %v907_v39 = vor.u32 %v906_v28, %v859_v57  ;;  %v884_v56 = vsel %vm2381_vm10, 0, %v2362_v38  ;;  %v885_v57 = vsel %vm2381_vm10, 0, %v2359_v31 }
 0x11f   : > { %v929_v8 = vsel %vm2319_vm6, %v905_v0, 0  ;;  %v887_v58 = vsel %vm2381_vm10, 0, %v2379_v6  ;;  %v1448_v6 = vld [vmem:[%s2614_s4] sm:$0x3] }
 0x120   : > { %987 = vrot.lane.b32.xlu1 %v929_v8, %s2082_s24  ;;  %v886_v8 = vsel %vm2381_vm10, 0, %v2377_v1  ;;  %v879_v1 = vsel %vm2381_vm10, 0, %v2291_v9  ;;  %1995 = vmatprep.subr.msk.bf16.mxu0 %vm459_vm0, %v1448_v6  ;;  %v1481_v7 = vsel %vm459_vm0, %v1448_v6, 0 }
 0x121   : > { %971 = vrot.lane.b32.xlu0 %v921_v52, %s2082_s24 }
 0x124   : > { %943 = vrot.lane.b32.xlu1 %v2270_v46, %s2081_s21  ;;  %v930_v46 = vsel %vm2319_vm6, %v907_v39, 0 }
 0x125   : > { %945 = vrot.lane.b32.xlu0 %v2299_v16, %s2081_s21  ;;  %v881_v16 = vsel %vm2381_vm10, 0, %v2316_v47  ;;  %v883_v47 = vsel %vm2381_vm10, 0, %v2342_v36 }
 0x128   : > { %973 = vrot.lane.b32.xlu1 %v922_v59, %s2082_s24 }
 0x129   : > { %959 = vrot.lane.b32.xlu0 %v794_v49, %s2081_s21  ;;  %s2533_s21 = scalar_lea.vmem %s2618_s8, %s1756_s19 }
 0x12c   : > { %975 = vrot.lane.b32.xlu1 %v923_v53, %s2082_s24 }
 0x130   : > { %989 = vrot.lane.b32.xlu1 %v930_v46, %s2082_s24  ;;  %v1286_v46 = vsel %vm1070_vm3, %v2040_v32, 0 }
 0x172   : > { %v948_v29 = vpop.permute.xlu0 %947 }
 0x173   : > { %v1002_v33 = vsel %vm428_vm1, %v881_v16, %v948_v29  ;;  %v880_v16 = vsel %vm2381_vm10, 0, %v2327_v51 }
 0x179   : > { %v978_v30 = vpop.permute.xlu1 %977 }
 0x17a   : > { %v2421_v34 = vsel %vm1021_vm11, %v1002_v33, %v978_v30 }
 0x17b   : > { %1890 = vmatprep.mubr.msk.bf16.mxu1 %vm1053_vm12, %v2421_v34  ;;  %v950_v50 = vpop.permute.xlu0 %949 }
 0x17c   : > { %v1005_v40 = vsel %vm428_vm1, %v882_v37, %v950_v50 }
 0x17f   : > { %v952_v35 = vpop.permute.xlu0 %951 }
 0x180   : > { %v1008_v49 = vsel %vm428_vm1, %v883_v47, %v952_v35 }
 0x182   : > { %v980_v45 = vpop.permute.xlu1 %979 }
 0x183   : > { %v1031_v44 = vsel %vm1021_vm11, %v1005_v40, %v980_v45  ;;  %v982_v55 = vpop.permute.xlu0 %981 }
 0x184   : > { %v1033_v41 = vsel %vm1021_vm11, %v1008_v49, %v982_v55  ;;  %1891 = vmatmul.mubr.msk.bf16.vlgmr.msra.gmra.mrb[0].mxu1 %vm1053_vm12, %v1031_v44 }
 0x185   : > { %1903 = vmatpush3.bf16.msra.mxu1 %v1179_v48  ;;  %1894 = vmatprep.mubr.msk.bf16.mxu1 %vm1053_vm12, %v1033_v41  ;;  %v1803_v48 = vld [vmem:[%s2616_s6] ss:$0 sm:$0xff] }
 0x186   : > { %v954_v36 = vpop.permute.xlu1 %953  ;;  %1994 = vmatprep.subr.msk.bf16.mxu1 %vm1070_vm3, %v2040_v32 }
 0x187   : > { %v956_v42 = vpop.permute.xlu0 %955  ;;  %v1011_v43 = vsel %vm428_vm1, %v884_v56, %v954_v36 }
 0x188   : > { %v1014_v54 = vsel %vm428_vm1, %v885_v57, %v956_v42 }
 0x18a   : > { %v984_v60 = vpop.permute.xlu1 %983 }
 0x18b   : > { %v1035_v61 = vsel %vm1021_vm11, %v1011_v43, %v984_v60  ;;  %v986_v62 = vpop.permute.xlu0 %985 }
 0x18c   : > { %v1037_v63 = vsel %vm1021_vm11, %v1014_v54, %v986_v62  ;;  %1895 = vmatmul.mubr.msk.bf16.gmra.mrb[4].mxu1 %vm1053_vm12, %v1035_v61 }
 0x18d   : > { %1898 = vmatprep.mubr.msk.bf16.mxu1 %vm1053_vm12, %v1037_v63 }
 0x18e   : > { %v958_v0 = vpop.permute.xlu1 %957 }
 0x18f   : > { %v942_v38 = vpop.permute.xlu0 %941  ;;  %v1017_v31 = vsel %vm428_vm1, %v886_v8, %v958_v0 }
 0x190   : > { %v993_v21 = vsel %vm428_vm1, %v878_v10, %v942_v38 }
 0x192   : > { %v988_v52 = vpop.permute.xlu1 %987 }
 0x193   : > { %v1039_v22 = vsel %vm1021_vm11, %v1017_v31, %v988_v52  ;;  %v972_v59 = vpop.permute.xlu0 %971 }
 0x194   : > { %v1023_v27 = vsel %vm1021_vm11, %v993_v21, %v972_v59  ;;  %1899 = vmatmul.mubr.msk.bf16.gmra.mrb[8].mxu1 %vm1053_vm12, %v1039_v22 }
 0x195   : > { %1904 = vmatprep.mubr.msk.bf16.mxu1 %vm1053_vm12, %v1023_v27 }
 0x196   : > { %v944_v28 = vpop.permute.xlu1 %943 }
 0x197   : > { %v946_v53 = vpop.permute.xlu0 %945  ;;  %v996_v15 = vsel %vm428_vm1, %v879_v1, %v944_v28 }
 0x198   : > { %v999_v33 = vsel %vm428_vm1, %v880_v16, %v946_v53 }
 0x19a   : > { %v974_v39 = vpop.permute.xlu1 %973 }
 0x19b   : > { %v1025_v29 = vsel %vm1021_vm11, %v996_v15, %v974_v39  ;;  %v960_v30 = vpop.permute.xlu0 %959 }
 0x19c   : > { %1886 = vmatprep.mubr.msk.bf16.mxu0 %vm1053_vm12, %v1025_v29  ;;  %1905 = vmatmul.mubr.msk.bf16.vlgmr.msra.gmra.mrb[12].mxu1 %vm1053_vm12, %v1025_v29  ;;  %v1020_v35 = vsel %vm428_vm1, %v887_v58, %v960_v30 }
 0x19d   : > { %1921 = vmatpush3.bf16.msra.mxu1 %v1286_v46 }
 0x19e   : > { %v976_v9 = vpop.permute.xlu1 %975 }
 0x19f   : > { %v1027_v50 = vsel %vm1021_vm11, %v999_v33, %v976_v9 }
 0x1a0   : > { %1887 = vmatmul.mubr.msk.bf16.vlgmr.msra.gmra.mrb[20].mxu0 %vm1053_vm12, %v1027_v50  ;;  %1908 = vmatprep.mubr.msk.bf16.mxu1 %vm1053_vm12, %v1027_v50 }
 0x1a1   : > { %1939 = vmatpush3.bf16.msra.mxu0 %v1481_v7 }
 0x1a2   : > { %v990_v37 = vpop.permute.xlu1 %989 }
 0x1a3   : > { %v1041_v51 = vsel %vm1021_vm11, %v1020_v35, %v990_v37 }
 0x1a4   : > { %1909 = vmatmul.mubr.msk.bf16.gmra.mrb[0].mxu1 %vm1053_vm12, %v2421_v34 }
 0x1a5   : > { %1912 = vmatprep.mubr.msk.bf16.mxu1 %vm1053_vm12, %v1031_v44 }
 0x1ac   : > { %1913 = vmatmul.mubr.msk.bf16.gmra.mrb[4].mxu1 %vm1053_vm12, %v1033_v41 }
 0x1ad   : > { %1916 = vmatprep.mubr.msk.bf16.mxu1 %vm1053_vm12, %v1035_v61 }
 0x1b4   : > { %1917 = vmatmul.mubr.msk.bf16.gmra.mrb[8].mxu1 %vm1053_vm12, %v1037_v63 }
 0x1b5   : > { %1922 = vmatprep.mubr.msk.bf16.mxu1 %vm1053_vm12, %v1027_v50 }
 0x1bc   : > { %1923 = vmatmul.mubr.msk.bf16.vlgmr.msra.gmra.mrb[12].mxu1 %vm1053_vm12, %v2421_v34 }
 0x1bd   : > { %1926 = vmatprep.mubr.msk.bf16.mxu1 %vm1053_vm12, %v1031_v44 }
 0x1c4   : > { %1927 = vmatmul.mubr.msk.bf16.gmra.mrb[0].mxu1 %vm1053_vm12, %v1033_v41 }
 0x1c5   : > { %1930 = vmatprep.mubr.msk.bf16.mxu1 %vm1053_vm12, %v1035_v61 }
 0x1cc   : > { %1931 = vmatmul.mubr.msk.bf16.gmra.mrb[4].mxu1 %vm1053_vm12, %v1037_v63 }
 0x1cd   : > { %1934 = vmatprep.mubr.msk.bf16.mxu1 %vm1053_vm12, %v1039_v22 }
 0x1d4   : > { %1935 = vmatmul.mubr.msk.bf16.gmra.mrb[8].mxu1 %vm1053_vm12, %v1041_v51 }
 0x273   : > { %v1888_v58 = vpop.f32.mrb[20].mxu0 }
 0x274   : > { %v1108_v34 = vpop.f32.mrb[21].mxu0 }
 0x275   : > { %v1889_v40 = vpop.f32.mrb[22].mxu0 }
 0x276   : > { %v1111_v47 = vpop.f32.mrb[23].mxu0 }
 0x28f   : > { %v1924_v45 = vpop.f32.mrb[12].mxu1 }
 0x290   : > { %v1958_v32 = vadd.f32 %v1924_v45, %v1888_v58  ;;  %v1322_v49 = vpop.f32.mrb[13].mxu1 }
 0x291   : > { %v1959_v44 = vadd.f32 %v1322_v49, %v1108_v34  ;;  %v1925_v55 = vpop.f32.mrb[14].mxu1 }
 0x292   : > { %v1410_v41 = vadd.f32 %v1958_v32, %v1803_v48  ;;  %v1960_v36 = vadd.f32 %v1925_v55, %v1889_v40  ;;  %v1325_v42 = vpop.f32.mrb[15].mxu1 }
 0x293   : > { %v1408_v56 = vadd.f32 %v1959_v44, %v1803_v48  ;;  %v1961_v43 = vadd.f32 %v1325_v42, %v1111_v47 }
 0x294   : > { %v1411_v57 = vadd.f32 %v1960_v36, %v1803_v48  ;;  %v1426_v54 = vmax.f32 %v1410_v41, 0.0 }
 0x295   : > { %v1409_v60 = vadd.f32 %v1961_v43, %v1803_v48  ;;  %v1424_v62 = vmax.f32 %v1408_v56, 0.0 }
 0x296   : > { %v1427_v61 = vmax.f32 %v1411_v57, 0.0 }
 0x297   : > { %v1425_v63 = vmax.f32 %v1409_v60, 0.0  ;;  %v1928_v0 = vpop.f32.mrb[0].mxu1 }
 0x298   : > { %v1441_v38 = vpack.c.bf16 %v1427_v61, %v1426_v54  ;;  %v1414_v8 = vadd.f32 %v1928_v0, %v1803_v48  ;;  %v1338_v31 = vpop.f32.mrb[1].mxu1  ;;  %v2522_v61 = vld [vmem:[%s2617_s7] ss:$0 sm:$0xff] }
 0x299   : > { %v1440_v10 = vpack.c.bf16 %v1425_v63, %v1424_v62  ;;  %v1412_v52 = vadd.f32 %v1803_v48, %v1338_v31  ;;  %v1929_v21 = vpop.f32.mrb[2].mxu1 }
 0x29a   : > { %v1415_v22 = vadd.f32 %v1929_v21, %v1803_v48  ;;  %v1341_v59 = vpop.f32.mrb[3].mxu1  ;;  %v1430_v28 = vmax.f32 %v1414_v8, 0.0 }
 0x29b   : > { %v1413_v27 = vadd.f32 %v1803_v48, %v1341_v59  ;;  %1940 = vmatprep.mubr.msk.bf16.mxu0 %vm428_vm1, %v1440_v10  ;;  %v1428_v53 = vmax.f32 %v1412_v52, 0.0 }
 0x29c   : > { %v1431_v1 = vmax.f32 %v1415_v22, 0.0  ;;  %1941 = vmatmul.mubr.msk.bf16.vlgmr.msra.gmra.mrb[24].mxu0 %vm428_vm1, %v1441_v38 }
 0x29d   : > { %v1429_v15 = vmax.f32 %v1413_v27, 0.0 }
 0x29e   : > { %v1443_v39 = vpack.c.bf16 %v1431_v1, %v1430_v28 }
 0x29f   : > { %v1442_v46 = vpack.c.bf16 %v1429_v15, %v1428_v53  ;;  %v1932_v29 = vpop.f32.mrb[4].mxu1 }
 0x2a0   : > { %v1418_v16 = vadd.f32 %v1932_v29, %v1803_v48  ;;  %v1354_v33 = vpop.f32.mrb[5].mxu1 }
 0x2a1   : > { %v1416_v9 = vadd.f32 %v1803_v48, %v1354_v33  ;;  %v1933_v30 = vpop.f32.mrb[6].mxu1  ;;  %1944 = vmatprep.mubr.msk.bf16.mxu0 %vm428_vm1, %v1442_v46 }
 0x2a2   : > { %v1419_v50 = vadd.f32 %v1933_v30, %v1803_v48  ;;  %v1357_v35 = vpop.f32.mrb[7].mxu1  ;;  %v1434_v51 = vmax.f32 %v1418_v16, 0.0 }
 0x2a3   : > { %v1417_v37 = vadd.f32 %v1803_v48, %v1357_v35  ;;  %v1432_v7 = vmax.f32 %v1416_v9, 0.0 }
 0x2a4   : > { %v1435_v6 = vmax.f32 %v1419_v50, 0.0  ;;  %1945 = vmatmul.mubr.msk.bf16.gmra.mrb[28].mxu0 %vm428_vm1, %v1443_v39 }
 0x2a5   : > { %v1433_v58 = vmax.f32 %v1417_v37, 0.0 }
 0x2a6   : > { %v1445_v34 = vpack.c.bf16 %v1435_v6, %v1434_v51 }
 0x2a7   : > { %v1444_v40 = vpack.c.bf16 %v1433_v58, %v1432_v7  ;;  %v1936_v47 = vpop.f32.mrb[8].mxu1 }
 0x2a8   : > { %v1422_v45 = vadd.f32 %v1936_v47, %v1803_v48  ;;  %v1370_v32 = vpop.f32.mrb[9].mxu1 }
 0x2a9   : > { %v1420_v49 = vadd.f32 %v1803_v48, %v1370_v32  ;;  %v1937_v44 = vpop.f32.mrb[10].mxu1  ;;  %1948 = vmatprep.mubr.msk.bf16.mxu0 %vm428_vm1, %v1444_v40 }
 0x2aa   : > { %v1423_v55 = vadd.f32 %v1937_v44, %v1803_v48  ;;  %v1373_v41 = vpop.f32.mrb[11].mxu1  ;;  %v1438_v42 = vmax.f32 %v1422_v45, 0.0 }
 0x2ab   : > { %v1421_v36 = vadd.f32 %v1803_v48, %v1373_v41  ;;  %v1436_v43 = vmax.f32 %v1420_v49, 0.0 }
 0x2ac   : > { %v1439_v56 = vmax.f32 %v1423_v55, 0.0  ;;  %1949 = vmatmul.mubr.msk.bf16.gmra.mrb[32].mxu0 %vm428_vm1, %v1445_v34 }
 0x2ad   : > { %v1437_v57 = vmax.f32 %v1421_v36, 0.0 }
 0x2ae   : > { %v1447_v60 = vpack.c.bf16 %v1439_v56, %v1438_v42 }
 0x2af   : > { %v1446_v54 = vpack.c.bf16 %v1437_v57, %v1436_v43 }
 0x2b1   : > { %1952 = vmatprep.mubr.msk.bf16.mxu0 %vm428_vm1, %v1446_v54 }
 0x2b4   : > { %1953 = vmatmul.mubr.msk.bf16.gmra.mrb[36].mxu0 %vm428_vm1, %v1447_v60 }
 0x36f   : > { %v1942_v62 = vpop.f32.mrb[24].mxu0 }
 0x370   : > { %v1526_v48 = vadd.f32 %v1942_v62, %v2522_v61  ;;  %v1517_v63 = vpop.f32.mrb[25].mxu0 }
 0x371   : > { %v1518_v0 = vadd.f32 %v2522_v61, %v1517_v63  ;;  %v1943_v38 = vpop.f32.mrb[26].mxu0 }
 0x372   : > { %v1582_v8 = vadd.f32 %v1526_v48, %v2184_v4  ;;  %v1529_v31 = vadd.f32 %v1943_v38, %v2522_v61  ;;  %v1520_v10 = vpop.f32.mrb[27].mxu0 }
 0x373   : > { %v1580_v52 = vadd.f32 %v1518_v0, %v2178_v2  ;;  %v1521_v21 = vadd.f32 %v2522_v61, %v1520_v10 }
 0x374   : > { %v1598_v22 = vmax.f32 %v1582_v8, 0.0  ;;  %v1583_v4 = vadd.f32 %v1529_v31, %v2187_v5 }
 0x375   : > { %v1596_v59 = vmax.f32 %v1580_v52, 0.0  ;;  %v1581_v27 = vadd.f32 %v1521_v21, %v2181_v3 }
 0x376   : > { %1614 = vst.msk [vmem:[%s2533_s21 + $0x10] sm:$0xff] %vm428_vm1, %v1598_v22  ;;  %v1599_v28 = vmax.f32 %v1583_v4, 0.0 }
 0x377   : > { %1612 = vst.msk [vmem:[%s2533_s21] sm:$0xff] %vm428_vm1, %v1596_v59  ;;  %v1597_v1 = vmax.f32 %v1581_v27, 0.0  ;;  %v1946_v53 = vpop.f32.mrb[28].mxu0 }
 0x378   : > { %1615 = vst.msk [vmem:[%s2533_s21 + $0x18] sm:$0xff] %vm428_vm1, %v1599_v28  ;;  %v1542_v2 = vadd.f32 %v1946_v53, %v2522_v61  ;;  %v1533_v15 = vpop.f32.mrb[29].mxu0 }
 0x379   : > { %1613 = vst.msk [vmem:[%s2533_s21 + $0x8] sm:$0xff] %vm428_vm1, %v1597_v1  ;;  %v1534_v5 = vadd.f32 %v2522_v61, %v1533_v15  ;;  %v1947_v3 = vpop.f32.mrb[30].mxu0 }
 0x37a   : > { %v1586_v39 = vadd.f32 %v1542_v2, %v2210_v13  ;;  %v1545_v46 = vadd.f32 %v1947_v3, %v2522_v61  ;;  %v1536_v29 = vpop.f32.mrb[31].mxu0 }
 0x37b   : > { %v1584_v16 = vadd.f32 %v1534_v5, %v2204_v11  ;;  %v1537_v33 = vadd.f32 %v2522_v61, %v1536_v29 }
 0x37c   : > { %v1602_v9 = vmax.f32 %v1586_v39, 0.0  ;;  %v1587_v30 = vadd.f32 %v1545_v46, %v2213_v14 }
 0x37d   : > { %v1600_v50 = vmax.f32 %v1584_v16, 0.0  ;;  %v1585_v35 = vadd.f32 %v1537_v33, %v2207_v12 }
 0x37e   : > { %1618 = vst.msk [vmem:[%s2533_s21 + $0x30] sm:$0xff] %vm428_vm1, %v1602_v9  ;;  %v1603_v37 = vmax.f32 %v1587_v30, 0.0 }
 0x37f   : > { %1616 = vst.msk [vmem:[%s2533_s21 + $0x20] sm:$0xff] %vm428_vm1, %v1600_v50  ;;  %v1601_v13 = vmax.f32 %v1585_v35, 0.0  ;;  %v1950_v51 = vpop.f32.mrb[32].mxu0 }
 0x380   : > { %1619 = vst.msk [vmem:[%s2533_s21 + $0x38] sm:$0xff] %vm428_vm1, %v1603_v37  ;;  %v1558_v11 = vadd.f32 %v1950_v51, %v2522_v61  ;;  %v1549_v6 = vpop.f32.mrb[33].mxu0 }
 0x381   : > { %1617 = vst.msk [vmem:[%s2533_s21 + $0x28] sm:$0xff] %vm428_vm1, %v1601_v13  ;;  %v1550_v14 = vadd.f32 %v2522_v61, %v1549_v6  ;;  %v1951_v12 = vpop.f32.mrb[34].mxu0 }
 0x382   : > { %v1590_v7 = vadd.f32 %v1558_v11, %v2228_v19  ;;  %v1561_v58 = vadd.f32 %v1951_v12, %v2522_v61  ;;  %v1552_v34 = vpop.f32.mrb[35].mxu0 }
 0x383   : > { %v1588_v40 = vadd.f32 %v1550_v14, %v2222_v17  ;;  %v1553_v47 = vadd.f32 %v2522_v61, %v1552_v34 }
 0x384   : > { %v1606_v45 = vmax.f32 %v1590_v7, 0.0  ;;  %v1591_v32 = vadd.f32 %v1561_v58, %v2231_v20 }
 0x385   : > { %v1604_v49 = vmax.f32 %v1588_v40, 0.0  ;;  %v1589_v44 = vadd.f32 %v1553_v47, %v2225_v18 }
 0x386   : > { %1622 = vst.msk [vmem:[%s2533_s21 + $0x50] sm:$0xff] %vm428_vm1, %v1606_v45  ;;  %v1607_v55 = vmax.f32 %v1591_v32, 0.0 }
 0x387   : > { %1620 = vst.msk [vmem:[%s2533_s21 + $0x40] sm:$0xff] %vm428_vm1, %v1604_v49  ;;  %v1605_v19 = vmax.f32 %v1589_v44, 0.0  ;;  %v1954_v41 = vpop.f32.mrb[36].mxu0 }
 0x388   : > { %1623 = vst.msk [vmem:[%s2533_s21 + $0x58] sm:$0xff] %vm428_vm1, %v1607_v55  ;;  %v1574_v17 = vadd.f32 %v1954_v41, %v2522_v61  ;;  %v1565_v36 = vpop.f32.mrb[37].mxu0 }
 0x389   : > { %1621 = vst.msk [vmem:[%s2533_s21 + $0x48] sm:$0xff] %vm428_vm1, %v1605_v19  ;;  %v1566_v20 = vadd.f32 %v2522_v61, %v1565_v36  ;;  %v1955_v18 = vpop.f32.mrb[38].mxu0 }
 0x38a   : > { %v1594_v42 = vadd.f32 %v1574_v17, %v2246_v25  ;;  %v1577_v56 = vadd.f32 %v1955_v18, %v2522_v61  ;;  %v1568_v43 = vpop.f32.mrb[39].mxu0 }
 0x38b   : > { %v1592_v57 = vadd.f32 %v1566_v20, %v2240_v23  ;;  %v1569_v60 = vadd.f32 %v2522_v61, %v1568_v43 }
 0x38c   : > { %v1610_v54 = vmax.f32 %v1594_v42, 0.0  ;;  %v1595_v62 = vadd.f32 %v1577_v56, %v2249_v26 }
 0x38d   : > { %v1608_v48 = vmax.f32 %v1592_v57, 0.0  ;;  %v1593_v63 = vadd.f32 %v1569_v60, %v2243_v24 }
 0x38e   : > { %1626 = vst.msk [vmem:[%s2533_s21 + $0x70] sm:$0xff] %vm428_vm1, %v1610_v54  ;;  %v1611_v0 = vmax.f32 %v1595_v62, 0.0 }
 0x38f   : > { %1624 = vst.msk [vmem:[%s2533_s21 + $0x60] sm:$0xff] %vm428_vm1, %v1608_v48  ;;  %v1609_v38 = vmax.f32 %v1593_v63, 0.0 }
 0x390   : > { %1627 = vst.msk [vmem:[%s2533_s21 + $0x78] sm:$0xff] %vm428_vm1, %v1611_v0 }
 0x391   : > { %1625 = vst.msk [vmem:[%s2533_s21 + $0x68] sm:$0xff] %vm428_vm1, %v1609_v38 }
 0x392 PF: > { %s18_s9 = sadd.s32 1, %s2079_s9   ;;  %s2623_s27 = smov %s2071_s29 }
 0x393   : > { %p15_p10 = scmp.ge.s32.totalorder %s18_s9, 6   ;;  %s2624_s28 = smov %s2075_s30 }
 0x394   : > { %s2625_s29 = smov %s2628_s10  ;;  %s2626_s30 = smov %s2632_s11 }
 0x395   :  { %17 = sbr.rel (!%p15_p10) target bundleno = 3 (0x3), region = 85 }

</bundles_post_ra>
